<compile_context>
chip_gen: v7x
topology: tpu7x:2x2x1
jax: 0.10.0
libtpu: 0.0.40
codegen_flags: <defaults>
</compile_context>

<pallas_src>
import functools

import jax
import jax.numpy as jnp
from jax.experimental import pallas as pl
from jax.experimental.pallas import tpu as pltpu


def ca_block_kernel(x_ref, w1_ref, wh_ref, ww_ref, pool_ref, eh_ref, ew_ref,
                    out_ref, *, H, W, C, Cr, Nb):
    f32 = jnp.float32

    x = x_ref[...]                                   # (Nb*C, H*W), native dtype, lane-dense

    # Adaptive avg pools (as column sums over W / over H) for the whole block:
    # one MXU push against a (H*W, H+W) 0/1 selection matrix.
    pooled = jnp.dot(x, pool_ref[...], preferred_element_type=f32)       # (Nb*C, H+W)
    pooled = pooled.reshape(Nb, C, H + W)            # cheap sublane split (C % 8 == 0)

    # conv_1x1 over the concatenated (H+W) axis + ReLU, batched over Nb (tiny).
    w1 = jnp.broadcast_to(w1_ref[...].astype(f32), (Nb, Cr, C))
    y = jnp.maximum(
        jnp.einsum("nrc,nce->nre", w1, pooled, preferred_element_type=f32), 0.0)

    # Turn pooled *sums* into *means*; the positive scale commutes with ReLU.
    yh = y[:, :, :H] * (1.0 / W)                     # (Nb, Cr, H)
    yw = y[:, :, H:] * (1.0 / H)                     # (Nb, Cr, W)

    # F_h / F_w 1x1 convs + sigmoid gates (tiny, f32 on MXU/EUP).
    wh = jnp.broadcast_to(wh_ref[...].astype(f32), (Nb, C, Cr))
    ww = jnp.broadcast_to(ww_ref[...].astype(f32), (Nb, C, Cr))
    s_h = jax.nn.sigmoid(jnp.einsum("ncr,nrh->nch", wh, yh,
                                    preferred_element_type=f32))          # (Nb, C, H)
    s_w = jax.nn.sigmoid(jnp.einsum("ncr,nrw->ncw", ww, yw,
                                    preferred_element_type=f32))          # (Nb, C, W)

    # Expand gates to the lane-dense (Nb*C, H*W) layout with 0/1 selection
    # matmuls (exact selection, no full-size relayout), fuse both gates in f32
    # and downcast once.
    gh = jnp.dot(s_h.reshape(Nb * C, H), eh_ref[...], preferred_element_type=f32)
    gw = jnp.dot(s_w.reshape(Nb * C, W), ew_ref[...], preferred_element_type=f32)
    g = (gh * gw).astype(x.dtype)                    # single full-tile downcast

    # out[c, h*W + w] = x[c, h*W + w] * s_h[c, h] * s_w[c, w]
    out_ref[...] = (x * g).astype(out_ref.dtype)


def _pick_tiling(N, bytes_per_batch):
    """Pick (nb, grid_n): ~2 MiB blocks, even grid-step count when N >= 2."""
    target = 2 << 20                                  # ~2 MiB lane-dense block per step
    nb = max(1, min(N, int(target // max(bytes_per_batch, 1))))
    grid_n = -(-N // nb)
    if N >= 2:
        # Batch axis is "parallel": keep an even, balanced number of grid steps
        # so both v7x TensorCores stay busy (no effect on v5e/v6e, 1 TC).
        if grid_n == 1:
            grid_n = 2
        elif grid_n % 2:
            grid_n += 1
        nb = -(-N // grid_n)
        grid_n = -(-N // nb)
        if grid_n % 2:
            grid_n += 1                               # one extra zero-padded step for balance
    return nb, grid_n


def ca_block(x, w1, wh, ww):
    N, C, H, W = x.shape
    Cr = w1.shape[0]
    HW = H * W
    dtype = x.dtype
    itemsize = jnp.dtype(dtype).itemsize

    nb, grid_n = _pick_tiling(N, C * HW * itemsize)
    n_pad = nb * grid_n

    # Lane-dense 2-D slab (N*C, H*W); pad the batch axis with zeros so the grid
    # divides evenly (padded rows are sliced off afterwards -- never fall back
    # to nb=1 for awkward N).
    x2 = x.reshape(N, C, HW)
    if n_pad != N:
        x2 = jnp.concatenate([x2, jnp.zeros((n_pad - N, C, HW), dtype)], axis=0)
    x2 = x2.reshape(n_pad * C, HW)

    # 0/1 pooling / gate-expansion selection matrices (exact in any dtype).
    hw = jnp.arange(HW, dtype=jnp.int32)
    h_idx = hw // W
    w_idx = hw % W
    pool01 = jnp.concatenate(
        [(h_idx[:, None] == jnp.arange(H, dtype=jnp.int32)[None, :]),
         (w_idx[:, None] == jnp.arange(W, dtype=jnp.int32)[None, :])],
        axis=1).astype(dtype)                                               # (HW, H+W)
    eh = (jnp.arange(H, dtype=jnp.int32)[:, None] == h_idx[None, :]
          ).astype(jnp.float32)                                             # (H, HW)
    ew = (jnp.arange(W, dtype=jnp.int32)[:, None] == w_idx[None, :]
          ).astype(jnp.float32)                                             # (W, HW)

    kernel = functools.partial(ca_block_kernel, H=H, W=W, C=C, Cr=Cr, Nb=nb)

    cost = pl.CostEstimate(
        flops=2 * n_pad * (C * HW * (H + W)      # pooling matmul
                           + Cr * C * (H + W)    # conv_1x1
                           + C * Cr * (H + W)    # F_h / F_w
                           + C * (H + W) * HW    # gate expansion
                           + C * HW),            # elementwise gating
        transcendentals=n_pad * C * (H + W),     # sigmoids
        bytes_accessed=2 * n_pad * C * HW * itemsize,
    )

    out2 = pl.pallas_call(
        kernel,
        out_shape=jax.ShapeDtypeStruct((n_pad * C, HW), dtype),
        grid=(grid_n,),
        in_specs=[
            pl.BlockSpec((nb * C, HW), lambda n: (n, 0)),
            pl.BlockSpec((Cr, C), lambda n: (0, 0)),
            pl.BlockSpec((C, Cr), lambda n: (0, 0)),
            pl.BlockSpec((C, Cr), lambda n: (0, 0)),
            pl.BlockSpec((HW, H + W), lambda n: (0, 0)),
            pl.BlockSpec((H, HW), lambda n: (0, 0)),
            pl.BlockSpec((W, HW), lambda n: (0, 0)),
        ],
        out_specs=pl.BlockSpec((nb * C, HW), lambda n: (n, 0)),
        compiler_params=pltpu.CompilerParams(
            dimension_semantics=("parallel",),
            vmem_limit_bytes=32 * 1024 * 1024),
        cost_estimate=cost,
    )(x2, w1, wh, ww, pool01, eh, ew)

    return out2.reshape(n_pad, C, H, W)[:N]


def ca_block_reference(x, w1, wh, ww):
    # Pure-JAX reference of the PyTorch forward (NCHW), full-precision matmuls.
    hi = jax.lax.Precision.HIGHEST
    xh = jnp.mean(x, axis=3)                                     # (N, C, H)
    xw = jnp.mean(x, axis=2)                                     # (N, C, W)
    yh = jax.nn.relu(jnp.einsum('rc,nch->nrh', w1, xh, precision=hi))
    yw = jax.nn.relu(jnp.einsum('rc,ncw->nrw', w1, xw, precision=hi))
    s_h = jax.nn.sigmoid(jnp.einsum('cr,nrh->nch', wh, yh, precision=hi))
    s_w = jax.nn.sigmoid(jnp.einsum('cr,nrw->ncw', ww, yw, precision=hi))
    return x * s_h[:, :, :, None] * s_w[:, :, None, :]


if __name__ == "__main__":
    # Small shapes consistent with the module: channel divisible by reduction.
    N, C, H, W = 2, 32, 16, 16
    reduction = 4
    Cr = C // reduction

    key = jax.random.PRNGKey(0)
    kx, k1, k2, k3 = jax.random.split(key, 4)

    x = jax.random.normal(kx, (N, C, H, W), dtype=jnp.float32)
    # 1x1 conv weights (out, in, 1, 1) collapsed to (out, in) matrices.
    w1 = jax.random.normal(k1, (Cr, C), dtype=jnp.float32) * 0.1   # conv_1x1
    wh = jax.random.normal(k2, (C, Cr), dtype=jnp.float32) * 0.1   # F_h
    ww = jax.random.normal(k3, (C, Cr), dtype=jnp.float32) * 0.1   # F_w

    out = ca_block(x, w1, wh, ww)
    out = jax.block_until_ready(out)

    ref = ca_block_reference(x, w1, wh, ww)
    # Tolerance sized to stay robust even if the MXU evaluates f32 matmuls via
    # reduced-precision bf16 passes; still catches any structural error.
    if not jnp.allclose(out, ref, atol=2e-3, rtol=1e-2):
        raise AssertionError("Pallas CA_Block output does not match reference")

    print("KERNEL_OK")
</pallas_src>

<mosaic_0001>
module attributes {stable_mosaic.version = 11 : i64} {
  func.func @ca_block_kernel(%arg0: i32, %arg1: memref<32x256xf32, #tpu.memory_space<vmem>>, %arg2: memref<8x32xf32, #tpu.memory_space<vmem>>, %arg3: memref<32x8xf32, #tpu.memory_space<vmem>>, %arg4: memref<32x8xf32, #tpu.memory_space<vmem>>, %arg5: memref<256x32xf32, #tpu.memory_space<vmem>>, %arg6: memref<16x256xf32, #tpu.memory_space<vmem>>, %arg7: memref<16x256xf32, #tpu.memory_space<vmem>>, %arg8: memref<32x256xf32, #tpu.memory_space<vmem>>) attributes {dimension_semantics = [#tpu.dimension_semantics<parallel>], iteration_bounds = array<i64: 2>, scalar_prefetch = 0 : i64, scratch_operands = 0 : i64, tpu.core_type = #tpu.core_type<tc>, window_params = [{transform_indices = @transform_0, window_bounds = array<i64: 32, 256>}, {pipeline_mode = #tpu.pipeline_mode<synchronous>, transform_indices = @transform_1, window_bounds = array<i64: 8, 32>}, {pipeline_mode = #tpu.pipeline_mode<synchronous>, transform_indices = @transform_2, window_bounds = array<i64: 32, 8>}, {pipeline_mode = #tpu.pipeline_mode<synchronous>, transform_indices = @transform_3, window_bounds = array<i64: 32, 8>}, {pipeline_mode = #tpu.pipeline_mode<synchronous>, transform_indices = @transform_4, window_bounds = array<i64: 256, 32>}, {pipeline_mode = #tpu.pipeline_mode<synchronous>, transform_indices = @transform_5, window_bounds = array<i64: 16, 256>}, {pipeline_mode = #tpu.pipeline_mode<synchronous>, transform_indices = @transform_6, window_bounds = array<i64: 16, 256>}, {transform_indices = @transform_7, window_bounds = array<i64: 32, 256>}]} {
    %c0 = arith.constant 0 : index
    %c0_0 = arith.constant 0 : index
    %0 = vector.load %arg1[%c0, %c0_0] : memref<32x256xf32, #tpu.memory_space<vmem>>, vector<32x256xf32>
    %c0_1 = arith.constant 0 : index
    %c0_2 = arith.constant 0 : index
    %1 = vector.load %arg5[%c0_1, %c0_2] : memref<256x32xf32, #tpu.memory_space<vmem>>, vector<256x32xf32>
    %cst = arith.constant dense<0.000000e+00> : vector<32x32xf32>
    %2 = tpu.matmul %0, %1, %cst {dimension_numbers = #tpu.dot_dimension_numbers<[1], [0], [0], [1], [0, 0, 1, 1], [], []>} : vector<32x256xf32>, vector<256x32xf32>, vector<32x32xf32> -> vector<32x32xf32>
    %3 = vector.shape_cast %2 : vector<32x32xf32> to vector<1x32x32xf32>
    %c0_3 = arith.constant 0 : index
    %c0_4 = arith.constant 0 : index
    %4 = vector.load %arg2[%c0_3, %c0_4] : memref<8x32xf32, #tpu.memory_space<vmem>>, vector<8x32xf32>
    %5 = vector.shape_cast %4 : vector<8x32xf32> to vector<1x8x32xf32>
    "tpu.trace_start"() <{level = 10 : i32, message = "nrc,nce->nre"}> : () -> ()
    %cst_5 = arith.constant dense<0.000000e+00> : vector<1x8x32xf32>
    %6 = tpu.matmul %5, %3, %cst_5 {dimension_numbers = #tpu.dot_dimension_numbers<[2], [1], [1], [2], [0, 0, 0, 1, 1, 2], [0], [0]>} : vector<1x8x32xf32>, vector<1x32x32xf32>, vector<1x8x32xf32> -> vector<1x8x32xf32>
    "tpu.trace_stop"() : () -> ()
    %cst_6 = arith.constant 0.000000e+00 : f32
    %7 = vector.broadcast %cst_6 : f32 to vector<1x8x32xf32>
    %8 = arith.maximumf %6, %7 : vector<1x8x32xf32>
    %9 = vector.extract_strided_slice %8 {offsets = [0, 0, 0], sizes = [1, 8, 16], strides = [1, 1, 1]} : vector<1x8x32xf32> to vector<1x8x16xf32>
    %cst_7 = arith.constant 6.250000e-02 : f32
    %10 = vector.broadcast %cst_7 : f32 to vector<1x8x16xf32>
    %11 = arith.mulf %9, %10 : vector<1x8x16xf32>
    %12 = vector.extract_strided_slice %8 {offsets = [0, 0, 16], sizes = [1, 8, 16], strides = [1, 1, 1]} : vector<1x8x32xf32> to vector<1x8x16xf32>
    %cst_8 = arith.constant 6.250000e-02 : f32
    %13 = vector.broadcast %cst_8 : f32 to vector<1x8x16xf32>
    %14 = arith.mulf %12, %13 : vector<1x8x16xf32>
    %c0_9 = arith.constant 0 : index
    %c0_10 = arith.constant 0 : index
    %15 = vector.load %arg3[%c0_9, %c0_10] : memref<32x8xf32, #tpu.memory_space<vmem>>, vector<32x8xf32>
    %16 = vector.shape_cast %15 : vector<32x8xf32> to vector<1x32x8xf32>
    %c0_11 = arith.constant 0 : index
    %c0_12 = arith.constant 0 : index
    %17 = vector.load %arg4[%c0_11, %c0_12] : memref<32x8xf32, #tpu.memory_space<vmem>>, vector<32x8xf32>
    %18 = vector.shape_cast %17 : vector<32x8xf32> to vector<1x32x8xf32>
    "tpu.trace_start"() <{level = 10 : i32, message = "ncr,nrh->nch"}> : () -> ()
    %cst_13 = arith.constant dense<0.000000e+00> : vector<1x32x16xf32>
    %19 = tpu.matmul %16, %11, %cst_13 {dimension_numbers = #tpu.dot_dimension_numbers<[2], [1], [1], [2], [0, 0, 0, 1, 1, 2], [0], [0]>} : vector<1x32x8xf32>, vector<1x8x16xf32>, vector<1x32x16xf32> -> vector<1x32x16xf32>
    "tpu.trace_stop"() : () -> ()
    %20 = arith.negf %19 : vector<1x32x16xf32>
    %21 = math.exp %20 : vector<1x32x16xf32>
    %cst_14 = arith.constant 1.000000e+00 : f32
    %22 = vector.broadcast %cst_14 : f32 to vector<1x32x16xf32>
    %23 = arith.addf %22, %21 : vector<1x32x16xf32>
    %24 = arith.divf %22, %23 : vector<1x32x16xf32>
    "tpu.trace_start"() <{level = 10 : i32, message = "ncr,nrw->ncw"}> : () -> ()
    %cst_15 = arith.constant dense<0.000000e+00> : vector<1x32x16xf32>
    %25 = tpu.matmul %18, %14, %cst_15 {dimension_numbers = #tpu.dot_dimension_numbers<[2], [1], [1], [2], [0, 0, 0, 1, 1, 2], [0], [0]>} : vector<1x32x8xf32>, vector<1x8x16xf32>, vector<1x32x16xf32> -> vector<1x32x16xf32>
    "tpu.trace_stop"() : () -> ()
    %26 = arith.negf %25 : vector<1x32x16xf32>
    %27 = math.exp %26 : vector<1x32x16xf32>
    %cst_16 = arith.constant 1.000000e+00 : f32
    %28 = vector.broadcast %cst_16 : f32 to vector<1x32x16xf32>
    %29 = arith.addf %28, %27 : vector<1x32x16xf32>
    %30 = arith.divf %28, %29 : vector<1x32x16xf32>
    %31 = vector.shape_cast %24 : vector<1x32x16xf32> to vector<32x16xf32>
    %c0_17 = arith.constant 0 : index
    %c0_18 = arith.constant 0 : index
    %32 = vector.load %arg6[%c0_17, %c0_18] : memref<16x256xf32, #tpu.memory_space<vmem>>, vector<16x256xf32>
    %cst_19 = arith.constant dense<0.000000e+00> : vector<32x256xf32>
    %33 = tpu.matmul %31, %32, %cst_19 {dimension_numbers = #tpu.dot_dimension_numbers<[1], [0], [0], [1], [0, 0, 1, 1], [], []>} : vector<32x16xf32>, vector<16x256xf32>, vector<32x256xf32> -> vector<32x256xf32>
    %34 = vector.shape_cast %30 : vector<1x32x16xf32> to vector<32x16xf32>
    %c0_20 = arith.constant 0 : index
    %c0_21 = arith.constant 0 : index
    %35 = vector.load %arg7[%c0_20, %c0_21] : memref<16x256xf32, #tpu.memory_space<vmem>>, vector<16x256xf32>
    %cst_22 = arith.constant dense<0.000000e+00> : vector<32x256xf32>
    %36 = tpu.matmul %34, %35, %cst_22 {dimension_numbers = #tpu.dot_dimension_numbers<[1], [0], [0], [1], [0, 0, 1, 1], [], []>} : vector<32x16xf32>, vector<16x256xf32>, vector<32x256xf32> -> vector<32x256xf32>
    %37 = arith.mulf %33, %36 : vector<32x256xf32>
    %38 = arith.mulf %0, %37 : vector<32x256xf32>
    %c0_23 = arith.constant 0 : index
    %c0_24 = arith.constant 0 : index
    %39 = vector.load %arg8[%c0_23, %c0_24] : memref<32x256xf32, #tpu.memory_space<vmem>>, vector<32x256xf32>
    tpu.vector_store %arg8[%c0_23, %c0_24], %38 {strides = array<i32>} : memref<32x256xf32, #tpu.memory_space<vmem>>, vector<32x256xf32>,
    return
  }
  func.func @transform_0(%arg0: i32) -> (i32, i32) {
    %c0_i32 = arith.constant 0 : i32
    %c0_i32_0 = arith.constant 0 : i32
    return %arg0, %c0_i32 : i32, i32
  }
  func.func @transform_1(%arg0: i32) -> (i32, i32) {
    %c0_i32 = arith.constant 0 : i32
    %c0_i32_0 = arith.constant 0 : i32
    %c0_i32_1 = arith.constant 0 : i32
    return %c0_i32, %c0_i32_0 : i32, i32
  }
  func.func @transform_2(%arg0: i32) -> (i32, i32) {
    %c0_i32 = arith.constant 0 : i32
    %c0_i32_0 = arith.constant 0 : i32
    %c0_i32_1 = arith.constant 0 : i32
    return %c0_i32, %c0_i32_0 : i32, i32
  }
  func.func @transform_3(%arg0: i32) -> (i32, i32) {
    %c0_i32 = arith.constant 0 : i32
    %c0_i32_0 = arith.constant 0 : i32
    %c0_i32_1 = arith.constant 0 : i32
    return %c0_i32, %c0_i32_0 : i32, i32
  }
  func.func @transform_4(%arg0: i32) -> (i32, i32) {
    %c0_i32 = arith.constant 0 : i32
    %c0_i32_0 = arith.constant 0 : i32
    %c0_i32_1 = arith.constant 0 : i32
    return %c0_i32, %c0_i32_0 : i32, i32
  }
  func.func @transform_5(%arg0: i32) -> (i32, i32) {
    %c0_i32 = arith.constant 0 : i32
    %c0_i32_0 = arith.constant 0 : i32
    %c0_i32_1 = arith.constant 0 : i32
    return %c0_i32, %c0_i32_0 : i32, i32
  }
  func.func @transform_6(%arg0: i32) -> (i32, i32) {
    %c0_i32 = arith.constant 0 : i32
    %c0_i32_0 = arith.constant 0 : i32
    %c0_i32_1 = arith.constant 0 : i32
    return %c0_i32, %c0_i32_0 : i32, i32
  }
  func.func @transform_7(%arg0: i32) -> (i32, i32) {
    %c0_i32 = arith.constant 0 : i32
    %c0_i32_0 = arith.constant 0 : i32
    return %arg0, %c0_i32 : i32, i32
  }
}

</mosaic_0001>

<bundles_post_ra>
// kernel: tpu_custom_call.1
= control target key start
LH: loop header
LB: loop body
LE: loop exit
PB: predicated region body
PF: predicated region fallthrough
CT: control target
= control target key end

     0   :  { %12 = vsyncpa [#allocation3], 0  ;;  %s1734_s0 = inlined_call_operand.vmem [shape: f32[64,256], index: 0, kind: input, shape index: {}]   ;;  %s1735_s1 = inlined_call_operand.vmem [shape: f32[8,32], index: 1, kind: input, shape index: {}]   ;;  %s1736_s2 = inlined_call_operand.vmem [shape: f32[32,8], index: 2, kind: input, shape index: {}]   ;;  %s1737_s3 = inlined_call_operand.vmem [shape: f32[32,8], index: 3, kind: input, shape index: {}]   ;;  %s1738_s4 = inlined_call_operand.vmem [shape: f32[256,32], index: 4, kind: input, shape index: {}]   ;;  %s1739_s5 = inlined_call_operand.vmem [shape: f32[16,256], index: 5, kind: input, shape index: {}]   ;;  %s1740_s6 = inlined_call_operand.vmem [shape: f32[16,256], index: 6, kind: input, shape index: {}]   ;;  %s1741_s7 = inlined_call_operand.hbm [shape: f32[64,256], index: 7, kind: output, shape index: {}]  }
   0x1   :  { %14 = vsyncpa [#allocation3 + $0x1], 0  ;;  %s1414_s24 = smov 0   ;;  %s1416_s25 = smov 0  }
   0x2   :  { %s1418_s26 = smov 0   ;;  %s1420_s27 = smov 0  }
   0x3 LB: > { %s1435_s28 = sadd.s32 4294967295, %s1365_s27   ;;  %s1052_s29 = sadd.s32 4294967294, %s1365_s27   ;;  %s1365_s27 = sphi %s1420_s27, %s1747_s27   ;;  %s1361_s26 = sphi %s1418_s26, %s1746_s26   ;;  %s1357_s25 = sphi %s1416_s25, %s1745_s25   ;;  %s1353_s24 = sphi %s1414_s24, %s1744_s24  }
   0x4   : > { %s1439_s30 = sadd.s32 1, %s1365_s27   ;;  %s179_s8 = sadd.s32 1, %s1361_s26 }
   0x5   : > { %s176_s9 = ssub.s32 %s1365_s27, %s1439_s30  ;;  %p189_p0 = scmp.ne.s32.totalorder %s1361_s26, %s1357_s25 }
   0x6   : > { %p177_p1 = scmp.eq.s32.totalorder %s176_s9, 0  ;;  %p190_p2 = scmp.eq.s32.totalorder %s1435_s28, 1 }
   0x7   : > { %p195_p3 = scmp.ne.s32.totalorder %s1357_s25, %s1353_s24  ;;  %p196_p4 = scmp.eq.s32.totalorder %s1052_s29, 1 }
   0x8   : > { %s1450_s10 = scalar_select %p177_p1, %s1361_s26, %s179_s8  }
   0x9   : > { %p1452_p5 = por %p190_p2, %p189_p0  ;;  %p1456_p6 = por %p196_p4, %p195_p3 }
   0xa   : > { %p1055_p7 = scmp.ge.s32.totalorder %s1365_s27, 1  ;;  %p242_p8 = scmp.lt.s32.totalorder %s1365_s27, 3 }
   0xc   : > { %p243_p9 = pnand %p1055_p7, %p242_p8 }
   0xd   : > { %v307_v0 = vld [vmem:[%s1738_s4 + $0x80] sm:$0xff] (!%p243_p9)  ;;  %v308_v1 = vld [vmem:[%s1738_s4 + $0x88] sm:$0xff] (!%p243_p9)  ;;  %s1057_s19 = sshll.u32 (!%p243_p9), %s1435_s28, 2  ;;  %v309_v5 = vld [vmem:[%s1738_s4 + $0x90] sm:$0xff] (!%p243_p9)  ;;  %v1367_v56 = vmov (!%p243_p9), 0.0|0.0   ;;  %vm1368_vm0 = vmmov (!%p243_p9), 0  }
   0xe   : > { %246 = sbr.rel (%p243_p9) target bundleno = 1096 (0x448), region = 48  ;;  %v291_v2 = vld [vmem:[%s1738_s4] sm:$0xff] (!%p243_p9)  ;;  %v1180_v3 = vpack.c.bf16 (!%p243_p9), %v308_v1, %v307_v0  ;;  %v292_v4 = vld [vmem:[%s1738_s4 + $0x8] sm:$0xff] (!%p243_p9)  ;;  %v310_v6 = vld [vmem:[%s1738_s4 + $0x98] sm:$0xff] (!%p243_p9)  ;;  %p276_p10 = scmp.lt.s32.totalorder (!%p243_p9), %s1057_s19, 7  ;;  %v1369_v57 = vmov (!%p243_p9), 0.0  }
   0xf   : > { %v1182_v7 = vpack.c.bf16 (!%p243_p9), %v292_v4, %v291_v2  ;;  %v1184_v8 = vpack.c.bf16 (!%p243_p9), %v310_v6, %v309_v5  ;;  %v293_v9 = vld [vmem:[%s1738_s4 + $0x10] sm:$0xff] (!%p243_p9)  ;;  %v294_v10 = vld [vmem:[%s1738_s4 + $0x18] sm:$0xff] (!%p243_p9)  ;;  %v311_v11 = vld [vmem:[%s1738_s4 + $0xa0] sm:$0xff] (!%p243_p9)  ;;  %vm409_vm1 = vcmask (!%p243_p9), 261120   ;;  %vm493_vm2 = vcmask (!%p243_p9), 64512   ;;  %s1370_s21 = smov (!%p243_p9), 112  }
  0x10   : > { %1181 = vmatprep.subr.bf16.mxu0 (!%p243_p9), %v1180_v3  ;;  %v312_v12 = vld [vmem:[%s1738_s4 + $0xa8] sm:$0xff] (!%p243_p9)  ;;  %v1186_v13 = vpack.c.bf16 (!%p243_p9), %v294_v10, %v293_v9  ;;  %v295_v15 = vld [vmem:[%s1738_s4 + $0x20] sm:$0xff] (!%p243_p9)  ;;  %v313_v17 = vld [vmem:[%s1738_s4 + $0xb0] sm:$0xff] (!%p243_p9)  ;;  %vm744_vm3 = vcmask (!%p243_p9), 130048   ;;  %s272_s22 = sand.u32 (!%p243_p9), 1, %s1357_s25   ;;  %s1093_s9 = sshll.u32 (!%p243_p9), %s1435_s28, 10 }
  0x11   : > { %1183 = vmatpush3.bf16.msra.mxu0 (!%p243_p9), %v1182_v7  ;;  %v1188_v14 = vpack.c.bf16 (!%p243_p9), %v312_v12, %v311_v11  ;;  %v296_v16 = vld [vmem:[%s1738_s4 + $0x28] sm:$0xff] (!%p243_p9)  ;;  %v314_v18 = vld [vmem:[%s1738_s4 + $0xb8] sm:$0xff] (!%p243_p9)  ;;  %v297_v21 = vld [vmem:[%s1738_s4 + $0x30] sm:$0xff] (!%p243_p9)  ;;  %s1056_s23 = sshll.u32 (!%p243_p9), %s272_s22, 6  ;;  %s1693_s28 = scalar_lea.sflag (!%p243_p9), [#allocation3], %s272_s22 }
  0x12   : > { %1185 = vmatprep.subr.bf16.mxu0 (!%p243_p9), %v1184_v8  ;;  %v1190_v19 = vpack.c.bf16 (!%p243_p9), %v296_v16, %v295_v15  ;;  %v1192_v20 = vpack.c.bf16 (!%p243_p9), %v314_v18, %v313_v17  ;;  %v298_v22 = vld [vmem:[%s1738_s4 + $0x38] sm:$0xff] (!%p243_p9)  ;;  %v315_v23 = vld [vmem:[%s1738_s4 + $0xc0] sm:$0xff] (!%p243_p9)  ;;  %v316_v24 = vld [vmem:[%s1738_s4 + $0xc8] sm:$0xff] (!%p243_p9)  ;;  %s274_s29 = scalar_lea.vmem (!%p243_p9), [#allocation2], %s1056_s23  ;;  %s1371_s16 = smov (!%p243_p9), [#allocation2]  }
  0x13   : > { %v1194_v26 = vpack.c.bf16 (!%p243_p9), %v298_v22, %v297_v21  ;;  %v1196_v27 = vpack.c.bf16 (!%p243_p9), %v316_v24, %v315_v23  ;;  %v299_v28 = vld [vmem:[%s1738_s4 + $0x40] sm:$0xff] (!%p243_p9)  ;;  %v300_v29 = vld [vmem:[%s1738_s4 + $0x48] sm:$0xff] (!%p243_p9)  ;;  %v317_v30 = vld [vmem:[%s1738_s4 + $0xd0] sm:$0xff] (!%p243_p9)  ;;  %s1307_s17 = sshll.u32 (!%p243_p9), %s1371_s16, 4  ;;  %s1308_s17 = int_to_ptr.vmem [resolvable:$false] %s1307_s17 }
  0x14   : > { %v318_v31 = vld [vmem:[%s1738_s4 + $0xd8] sm:$0xff] (!%p243_p9)  ;;  %v1198_v32 = vpack.c.bf16 (!%p243_p9), %v300_v29, %v299_v28  ;;  %v301_v34 = vld [vmem:[%s1738_s4 + $0x50] sm:$0xff] (!%p243_p9)  ;;  %v319_v36 = vld [vmem:[%s1738_s4 + $0xe0] sm:$0xff] (!%p243_p9)  ;;  %s1309_s20 = scalar_lea.vmem (!%p243_p9), %s1308_s17, 2048 }
  0x15   : > { %s1749_s19 = smov (!%p276_p10, %s1057_s19), 7  ;;  %1187 = vmatpush3.bf16.msra.mxu0 %v1186_v13  ;;  %v1200_v33 = vpack.c.bf16 %v318_v31, %v317_v30  ;;  %v302_v35 = vld [vmem:[%s1738_s4 + $0x58] sm:$0xff]  ;;  %v320_v37 = vld [vmem:[%s1738_s4 + $0xe8] sm:$0xff]  ;;  %v303_v40 = vld [vmem:[%s1738_s4 + $0x60] sm:$0xff] }
  0x16   : > { %s1091_s8 = sshll.u32 %s1749_s19, 4  ;;  %1189 = vmatprep.subr.bf16.mxu0 %v1188_v14  ;;  %v1202_v38 = vpack.c.bf16 %v302_v35, %v301_v34  ;;  %v1204_v39 = vpack.c.bf16 %v320_v37, %v319_v36  ;;  %v304_v41 = vld [vmem:[%s1738_s4 + $0x68] sm:$0xff]  ;;  %v321_v42 = vld [vmem:[%s1738_s4 + $0xf0] sm:$0xff]  ;;  %v322_v43 = vld [vmem:[%s1738_s4 + $0xf8] sm:$0xff] }
  0x17   : > { %s1508_s18 = scalar_lea.vmem %s1734_s0, %s1091_s8  ;;  %v1206_v44 = vpack.c.bf16 %v304_v41, %v303_v40  ;;  %v1208_v45 = vpack.c.bf16 %v322_v43, %v321_v42  ;;  %v305_v46 = vld [vmem:[%s1738_s4 + $0x70] sm:$0xff]  ;;  %v306_v47 = vld [vmem:[%s1738_s4 + $0x78] sm:$0xff]  ;;  %v408_v8 = vld [vmem:[%s1735_s1] sm:$0xff]  ;;  %s990_s8 = sshll.u32 %s274_s29, 4  ;;  %s1688_s8 = int_to_ptr.vmem [resolvable:$true] %s990_s8 }
  0x18   : > { %v1523_v25 = vld [vmem:[%s1508_s18 + $0x8] sm:$0xff]  ;;  %v1210_v48 = vpack.c.bf16 %v306_v47, %v305_v46  ;;  %v1569_v49 = vld [vmem:[%s1508_s18] sm:$0xff]  ;;  %v1572_v50 = vld [vmem:[%s1508_s18 + $0x18] sm:$0xff]  ;;  %s1303_s15 = scalar_lea.vmem %s1688_s8, 1024  ;;  %p1310_p0 = scmp.lt.s32.totalorder %s1688_s8, %s1308_s17 }
  0x19   : > { %387 = vmatprep.mubr.f32.mxu0 %v1523_v25  ;;  %1191 = vmatpush3.bf16.msra.mxu0 %v1190_v19  ;;  %v1577_v51 = vld [vmem:[%s1508_s18 + $0x10] sm:$0xff]  ;;  %v1580_v52 = vld [vmem:[%s1508_s18 + $0x28] sm:$0xff]  ;;  %v1585_v53 = vld [vmem:[%s1508_s18 + $0x20] sm:$0xff]  ;;  %p1304_p11 = scmp.ne.s32.totalorder %s1688_s8, %s1303_s15  ;;  %p1311_p1 = scmp.lt.s32.totalorder %s1309_s20, %s1303_s15 }
  0x1a   : > { %1193 = vmatprep.subr.bf16.mxu0 %v1192_v20  ;;  %v1588_v54 = vld [vmem:[%s1508_s18 + $0x38] sm:$0xff]  ;;  %v1593_v55 = vld [vmem:[%s1508_s18 + $0x30] sm:$0xff]  ;;  %v485_v9 = vld [vmem:[%s1736_s2] sm:$0xff]  ;;  %s1686_s18 = scalar_lea.hbm %s1741_s7, %s1093_s9 }
  0x1b   : > { %1166 = vmatprep.mubr.msk.f32.mxu1 %vm493_vm2, %v485_v9  ;;  %v486_v14 = vld [vmem:[%s1736_s2 + $0x8] sm:$0xff]  ;;  %v487_v15 = vld [vmem:[%s1736_s2 + $0x10] sm:$0xff]  ;;  %v488_v16 = vld [vmem:[%s1736_s2 + $0x18] sm:$0xff]  ;;  %p1305_p12 = pnand %p1304_p11, %p1452_p5  ;;  %p1312_p2 = por %p1311_p1, %p1310_p0 }
  0x1c   : > { %v489_v17 = vld [vmem:[%s1737_s3] sm:$0xff]  ;;  %v490_v19 = vld [vmem:[%s1737_s3 + $0x8] sm:$0xff]  ;;  %v491_v20 = vld [vmem:[%s1737_s3 + $0x10] sm:$0xff] }
  0x1d   : > { %1195 = vmatpush3.bf16.msra.mxu0 %v1194_v26  ;;  %v492_v21 = vld [vmem:[%s1737_s3 + $0x18] sm:$0xff]  ;;  %v741_v22 = vld [vmem:[%s1739_s5 + $0x8] sm:$0xff]  ;;  %v740_v26 = vld [vmem:[%s1739_s5] sm:$0xff]  ;;  %p1306_p13 = pneg %p1305_p12 }
  0x1e   : > { %1197 = vmatprep.subr.bf16.mxu0 %v1196_v27  ;;  %v743_v23 = vld [vmem:[%s1739_s5 + $0x18] sm:$0xff]  ;;  %v742_v27 = vld [vmem:[%s1739_s5 + $0x10] sm:$0xff]  ;;  %v847_v37 = vld [vmem:[%s1740_s6 + $0x8] sm:$0xff] }
  0x1f   : > { %v1218_v24 = vpack.c.bf16 %v743_v23, %v741_v22  ;;  %v1220_v28 = vpack.c.bf16 %v742_v27, %v740_v26  ;;  %v846_v47 = vld [vmem:[%s1740_s6] sm:$0xff]  ;;  %p1313_p3 = pnand %p1312_p2, %p1306_p13 }
  0x21   : > { %1199 = vmatpush3.bf16.msra.mxu0 %v1198_v32 }
  0x22   : > { %1201 = vmatprep.subr.bf16.mxu0 %v1200_v33 }
  0x25   : > { %1203 = vmatpush3.bf16.msra.mxu0 %v1202_v38  ;;  %v849_v38 = vld [vmem:[%s1740_s6 + $0x18] sm:$0xff] }
  0x26   : > { %1205 = vmatprep.subr.bf16.mxu0 %v1204_v39  ;;  %v1222_v39 = vpack.c.bf16 %v849_v38, %v847_v37 }
  0x29   : > { %1207 = vmatpush3.bf16.msra.mxu0 %v1206_v44 }
  0x2a   : > { %1209 = vmatprep.subr.bf16.mxu0 %v1208_v45 }
  0x2d   : > { %1211 = vmatpush3.bf16.msra.mxu0 %v1210_v48  ;;  %v848_v48 = vld [vmem:[%s1740_s6 + $0x10] sm:$0xff] }
  0x2e   : > { %1212 = vmatprep.subr.bf16.mxu0 %v1367_v56 }
  0x30   : > { %388 = vmatmul.mubr.f32.vlgmr.msra.gmra.mrb[0].mxu0 %v1569_v49 }
  0x31   : > { %392 = vmatprep.mubr.f32.mxu0 %v1572_v50 }
  0x34   : > { %393 = vmatmul.mubr.f32.gmra.mrb[2].mxu0 %v1577_v51 }
  0x35   : > { %397 = vmatprep.mubr.f32.mxu0 %v1580_v52 }
  0x38   : > { %398 = vmatmul.mubr.f32.gmra.mrb[4].mxu0 %v1585_v53 }
  0x39   : > { %402 = vmatprep.mubr.f32.mxu0 %v1588_v54 }
  0x3c   : > { %403 = vmatmul.mubr.f32.gmra.mrb[6].mxu0 %v1593_v55 }
  0x3d   : > { %1161 = vmatprep.mubr.msk.f32.mxu0 %vm1368_vm0, %v1369_v57 }
 0x103   : > { %v1126_v58 = vpop.f32.mrb[0].mxu0 }
 0x104   : > { %v1127_v59 = vpop.f32.mrb[1].mxu0 }
 0x105   : > { %v1128_v60 = vadd.f32 %v1127_v59, %v1126_v58  ;;  %v1224_v58 = vpack.c.bf16 %v848_v48, %v846_v47 }
 0x107   : > { %v1129_v61 = vpop.f32.mrb[2].mxu0 }
 0x108   : > { %v1130_v62 = vpop.f32.mrb[3].mxu0 }
 0x109   : > { %v1131_v63 = vadd.f32 %v1130_v62, %v1129_v61 }
 0x10b   : > { %v1213_v0 = vpack.c.bf16 %v1131_v63, %v1128_v60  ;;  %v1132_v1 = vpop.f32.mrb[4].mxu0 }
 0x10c   : > { %v1133_v2 = vpop.f32.mrb[5].mxu0 }
 0x10d   : > { %v1134_v3 = vadd.f32 %v1133_v2, %v1132_v1  ;;  %1214 = vmatpush3.bf16.msra.mxu0 %v1213_v0 }
 0x10e   : > { %1215 = vmatprep.subr.bf16.mxu0 %v1367_v56 }
 0x10f   : > { %v1135_v4 = vpop.f32.mrb[6].mxu0 }
 0x110   : > { %v1136_v5 = vpop.f32.mrb[7].mxu0 }
 0x111   : > { %v1137_v6 = vadd.f32 %v1136_v5, %v1135_v4 }
 0x113   : > { %v1216_v7 = vpack.c.bf16 %v1137_v6, %v1134_v3 }
 0x115   : > { %1217 = vmatpush3.bf16.msra.mxu0 %v1216_v7 }
 0x118   : > { %1162 = vmatmul.mubr.msk.f32.vlgmr.msra.gmra.mrb[8].mxu0 %vm409_vm1, %v408_v8 }
 0x1eb   : > { %v479_v10 = vpop.f32.mrb[8].mxu0 }
 0x1ec   : > { %v483_v11 = vmax.f32 %v479_v10, 0.0  ;;  %v1163_v12 = vpop.f32.mrb[9].mxu0 }
 0x1ee   : > { %v484_v13 = vmul.f32 0.0625, %v483_v11 }
 0x1f0   : > { %1164 = vmatprep.subr.mxu1 %v484_v13  ;;  %616 = vrot.lane.b32.xlu0 %v484_v13, %s1370_s21 }
 0x1f1   : > { %1165 = vmatpush3.msra.mxu1 %v484_v13 }
 0x1f2   : > { %1167 = vmatmul.mubr.msk.f32.vlgmr.msra.gmra.mrb[0].mxu1 %vm493_vm2, %v486_v14 }
 0x1f3   : > { %1169 = vmatprep.mubr.msk.f32.mxu1 %vm493_vm2, %v487_v15 }
 0x1f6   : > { %1170 = vmatmul.mubr.msk.f32.gmra.mrb[2].mxu1 %vm493_vm2, %v488_v16 }
 0x1f7   : > { %1174 = vmatprep.mubr.msk.f32.mxu1 %vm493_vm2, %v489_v17 }
 0x262   : > { %v617_v18 = vpop.permute.xlu0 %616 }
 0x263   : > { %1172 = vmatprep.subr.mxu1 %v617_v18 }
 0x264   : > { %1173 = vmatpush3.msra.mxu1 %v617_v18 }
 0x265   : > { %1175 = vmatmul.mubr.msk.f32.vlgmr.msra.gmra.mrb[4].mxu1 %vm493_vm2, %v490_v19  ;;  %1219 = vmatprep.subr.bf16.mxu1 %v1218_v24 }
 0x266   : > { %1177 = vmatprep.mubr.msk.f32.mxu1 %vm493_vm2, %v491_v20  ;;  %1221 = vmatpush1.bf16.msra.mxu1 %v1220_v28 }
 0x267   : > { %1223 = vmatprep.subr.bf16.mxu1 %v1222_v39 }
 0x269   : > { %1178 = vmatmul.mubr.msk.f32.gmra.mrb[6].mxu1 %vm493_vm2, %v492_v21 }
 0x26a   : > { %821 = vmatprep.mubr.f32.mxu1 %v1369_v57 }
 0x2c5   : > { %v1168_v29 = vpop.f32.mrb[0].mxu1 }
 0x2c6   : > { %v1066_v30 = vmul.f32 -1.442695, %v1168_v29  ;;  %v572_v31 = vpop.f32.mrb[1].mxu1 }
 0x2c7   : > { %v1065_v32 = vmul.f32 -1.442695, %v572_v31 }
 0x2c8   : > { %1271 = vpow2.f32 %v1066_v30 }
 0x2c9   : > { %1273 = vpow2.f32 %v1065_v32  ;;  %v1171_v33 = vpop.f32.mrb[2].mxu1 }
 0x2ca   : > { %v582_v34 = vpop.f32.mrb[3].mxu1  ;;  %v1068_v35 = vmul.f32 -1.442695, %v1171_v33 }
 0x2cb   : > { %v1067_v36 = vmul.f32 -1.442695, %v582_v34 }
 0x2cd   : > { %1275 = vpow2.f32 %v1067_v36 }
 0x2ce   : > { %1277 = vpow2.f32 %v1068_v35 }
 0x2d2   : > { %v1272_v40 = vpop.eup %1271 }
 0x2d3   : > { %v1274_v41 = vpop.eup %1273  ;;  %v604_v42 = vadd.f32 1.0, %v1272_v40 }
 0x2d4   : > { %v603_v43 = vadd.f32 1.0, %v1274_v41 }
 0x2d6   : > { %1279 = vrcp.f32 %v603_v43 }
 0x2d7   : > { %v1276_v44 = vpop.eup %1275  ;;  %1281 = vrcp.f32 %v604_v42 }
 0x2d8   : > { %v605_v45 = vadd.f32 1.0, %v1276_v44  ;;  %v1278_v46 = vpop.eup %1277 }
 0x2d9   : > { %v606_v56 = vadd.f32 1.0, %v1278_v46 }
 0x2da   : > { %1283 = vrcp.f32 %v605_v45 }
 0x2db   : > { %1285 = vrcp.f32 %v606_v56 }
 0x2e0   : > { %v1280_v59 = vpop.eup %1279 }
 0x2e1   : > { %1077 = vmatmul.mubr.msk.f32.vlgmr.msra.gmra.mrb[8].mxu1 %vm744_vm3, %v1280_v59  ;;  %v1282_v60 = vpop.eup %1281 }
 0x2e2   : > { %827 = vmatprep.mubr.f32.mxu1 %v1369_v57  ;;  %1225 = vmatpush1.bf16.msra.mxu1 %v1224_v58 }
 0x2e4   : > { %v1284_v61 = vpop.eup %1283 }
 0x2e5   : > { %1078 = vmatmul.mubr.msk.f32.gmra.mrb[10].mxu1 %vm744_vm3, %v1282_v60  ;;  %v1286_v62 = vpop.eup %1285 }
 0x2e6   : > { %833 = vmatprep.mubr.f32.mxu1 %v1369_v57 }
 0x2e9   : > { %1079 = vmatmul.mubr.msk.f32.gmra.mrb[12].mxu1 %vm744_vm3, %v1284_v61 }
 0x2ea   : > { %839 = vmatprep.mubr.f32.mxu1 %v1369_v57 }
 0x2ed   : > { %1080 = vmatmul.mubr.msk.f32.gmra.mrb[14].mxu1 %vm744_vm3, %v1286_v62 }
 0x2ee   : > { %926 = vmatprep.mubr.f32.mxu1 %v1369_v57 }
 0x338   : > { %v1176_v63 = vpop.f32.mrb[4].mxu1 }
 0x339   : > { %v1074_v0 = vmul.f32 -1.442695, %v1176_v63  ;;  %v697_v1 = vpop.f32.mrb[5].mxu1 }
 0x33a   : > { %v1073_v2 = vmul.f32 -1.442695, %v697_v1 }
 0x33b   : > { %1287 = vpow2.f32 %v1074_v0 }
 0x33c   : > { %1289 = vpow2.f32 %v1073_v2  ;;  %v1179_v3 = vpop.f32.mrb[6].mxu1 }
 0x33d   : > { %v707_v4 = vpop.f32.mrb[7].mxu1  ;;  %v1076_v6 = vmul.f32 -1.442695, %v1179_v3 }
 0x33e   : > { %v1075_v5 = vmul.f32 -1.442695, %v707_v4 }
 0x340   : > { %1291 = vpow2.f32 %v1075_v5 }
 0x341   : > { %1293 = vpow2.f32 %v1076_v6 }
 0x345   : > { %v1288_v7 = vpop.eup %1287 }
 0x346   : > { %v1290_v8 = vpop.eup %1289  ;;  %v729_v10 = vadd.f32 1.0, %v1288_v7 }
 0x347   : > { %v728_v9 = vadd.f32 1.0, %v1290_v8 }
 0x349   : > { %1295 = vrcp.f32 %v728_v9 }
 0x34a   : > { %v1292_v11 = vpop.eup %1291  ;;  %1297 = vrcp.f32 %v729_v10 }
 0x34b   : > { %v730_v12 = vadd.f32 1.0, %v1292_v11  ;;  %v1294_v13 = vpop.eup %1293 }
 0x34c   : > { %v731_v14 = vadd.f32 1.0, %v1294_v13 }
 0x34d   : > { %1299 = vrcp.f32 %v730_v12 }
 0x34e   : > { %1301 = vrcp.f32 %v731_v14 }
 0x353   : > { %v1296_v15 = vpop.eup %1295 }
 0x354   : > { %1081 = vmatmul.mubr.msk.f32.vlgmr.msra.gmra.mrb[16].mxu1 %vm744_vm3, %v1296_v15  ;;  %v1298_v16 = vpop.eup %1297 }
 0x355   : > { %932 = vmatprep.mubr.f32.mxu1 %v1369_v57 }
 0x357   : > { %v1300_v17 = vpop.eup %1299 }
 0x358   : > { %1082 = vmatmul.mubr.msk.f32.gmra.mrb[18].mxu1 %vm744_vm3, %v1298_v16  ;;  %v1302_v18 = vpop.eup %1301 }
 0x359   : > { %938 = vmatprep.mubr.f32.mxu1 %v1369_v57 }
 0x35c   : > { %1083 = vmatmul.mubr.msk.f32.gmra.mrb[20].mxu1 %vm744_vm3, %v1300_v17 }
 0x35d   : > { %944 = vmatprep.mubr.f32.mxu1 %v1369_v57 }
 0x360   : > { %1084 = vmatmul.mubr.msk.f32.gmra.mrb[22].mxu1 %vm744_vm3, %v1302_v18 }
 0x3b4   : > { %v823_v19 = vpop.f32.mrb[8].mxu1 }
 0x3b5   : > { %v825_v20 = vpop.f32.mrb[9].mxu1 }
 0x3b8   : > { %v829_v21 = vpop.f32.mrb[10].mxu1 }
 0x3b9   : > { %v831_v22 = vpop.f32.mrb[11].mxu1 }
 0x3bc   : > { %v835_v23 = vpop.f32.mrb[12].mxu1 }
 0x3bd   : > { %v837_v24 = vpop.f32.mrb[13].mxu1 }
 0x3c0   : > { %v841_v26 = vpop.f32.mrb[14].mxu1 }
 0x3c1   : > { %v843_v27 = vpop.f32.mrb[15].mxu1 }
 0x427   : > { %v928_v28 = vpop.f32.mrb[16].mxu1 }
 0x428   : > { %v951_v29 = vmul.f32 %v928_v28, %v823_v19  ;;  %v930_v30 = vpop.f32.mrb[17].mxu1 }
 0x429   : > { %v952_v31 = vmul.f32 %v930_v30, %v825_v20 }
 0x42a   : > { %v959_v57 = vmul.f32 %v951_v29, %v1569_v49 }
 0x42b   : > { %v960_v32 = vmul.f32 %v952_v31, %v1523_v25  ;;  %v934_v33 = vpop.f32.mrb[18].mxu1 }
 0x42c   : > { %967 = vst [vmem:[%s274_s29] sm:$0xff] %v959_v57  ;;  %v953_v34 = vmul.f32 %v934_v33, %v829_v21  ;;  %v936_v35 = vpop.f32.mrb[19].mxu1 }
 0x42d   : > { %968 = vst [vmem:[%s274_s29 + $0x8] sm:$0xff] %v960_v32  ;;  %v954_v36 = vmul.f32 %v936_v35, %v831_v22 }
 0x42e   : > { %v961_v37 = vmul.f32 %v953_v34, %v1577_v51 }
 0x42f   : > { %v962_v38 = vmul.f32 %v954_v36, %v1572_v50  ;;  %v940_v39 = vpop.f32.mrb[20].mxu1 }
 0x430   : > { %969 = vst [vmem:[%s274_s29 + $0x10] sm:$0xff] %v961_v37  ;;  %v955_v40 = vmul.f32 %v940_v39, %v835_v23  ;;  %v942_v41 = vpop.f32.mrb[21].mxu1 }
 0x431   : > { %970 = vst [vmem:[%s274_s29 + $0x18] sm:$0xff] %v962_v38  ;;  %v956_v49 = vmul.f32 %v942_v41, %v837_v24 }
 0x432   : > { %v963_v25 = vmul.f32 %v955_v40, %v1585_v53 }
 0x433   : > { %v964_v42 = vmul.f32 %v956_v49, %v1580_v52  ;;  %v946_v43 = vpop.f32.mrb[22].mxu1 }
 0x434   : > { %971 = vst [vmem:[%s274_s29 + $0x20] sm:$0xff] %v963_v25  ;;  %v957_v44 = vmul.f32 %v946_v43, %v841_v26  ;;  %v948_v51 = vpop.f32.mrb[23].mxu1 }
 0x435   : > { %972 = vst [vmem:[%s274_s29 + $0x28] sm:$0xff] %v964_v42  ;;  %v958_v50 = vmul.f32 %v948_v51, %v843_v27 }
 0x436   : > { %v965_v45 = vmul.f32 %v957_v44, %v1593_v55 }
 0x437   : > { %v966_v52 = vmul.f32 %v958_v50, %v1588_v54 }
 0x438   : > { %973 = vst [vmem:[%s274_s29 + $0x30] sm:$0xff] %v965_v45 }
 0x439   : > { %974 = vst [vmem:[%s274_s29 + $0x38] sm:$0xff] %v966_v52 }
 0x43a   : > { %1316 = shalt.err (!%p1313_p3)
}
 0x43b   : > { %s1317_s19 = scalar_lea.hbm %s1686_s18, 1024  ;;  %s1321_s23 = scalar_lea.hbm %s1741_s7, 2048 }
 0x43c   : > { %p1318_p4 = scmp.ne.s32.totalorder %s1686_s18, %s1317_s19  ;;  %p1322_p9 = scmp.lt.u32.totalorder %s1686_s18, %s1741_s7 }
 0x43d   : > { %p1323_p10 = scmp.lt.u32.totalorder %s1321_s23, %s1317_s19  ;;  %p1325_p12 = scmp.lt.u32.totalorder %s1317_s19, %s1686_s18 }
 0x43e   : > { %p1319_p7 = pnand %p1318_p4, %p1452_p5 }
 0x43f   : > { %p1324_p11 = por %p1323_p10, %p1322_p9 }
 0x440   : > { %p1320_p8 = pneg %p1319_p7 }
 0x441   : > { %p1326_p13 = por %p1325_p12, %p1324_p11 }
 0x443   : > { %p1327_p0 = pnand %p1326_p13, %p1320_p8 }
 0x445   : > { %1330 = shalt.err (!%p1327_p0)
}
 0x446   : > { %s1372_s13 = smov 256   ;;  %s1373_s14 = smov 16  }
 0x447   : > { %1226 = dma.vmem_to_hbm [thread:$0]  (%p1452_p5), %s1688_s8, 1024, %s1686_s18, %s1693_s28, %s1372_s13, %s1372_s13, %s1373_s14  }
 0x448 PF: > { %p1232_p1 = scmp.ge.s32.totalorder %s1365_s27, 2  ;;  %s1005_s15 = sand.u32 1, %s1353_s24  }
 0x449   : > { %s1006_s16 = scalar_lea.sflag [#allocation3], %s1005_s15 }
 0x44a   : > { %p1229_p2 = pnand %p1232_p1, %p1456_p6 }
 0x44c   : > { %1348 = dma.done.wait (!%p1229_p2), %s1006_s16, 1024  }
 0x44d   : > { %1350 = vsyncadd (!%p1229_p2), %s1006_s16, 4294966272  ;;  %p17_p3 = scmp.ge.s32.totalorder %s1439_s30, 4   ;;  %s1744_s24 = smov %s1357_s25 }
 0x44e   : > { %s1745_s25 = smov %s1361_s26  ;;  %s1746_s26 = smov %s1450_s10 }
 0x44f   : > { %s1747_s27 = smov %s1439_s30  ;;  %19 = sbr.rel (!%p17_p3) target bundleno = 3 (0x3), region = 83 }
 0x456   :  { %1011 = vsyncpa [#allocation3], 1 }
 0x457   :  { %1013 = vsyncpa [#allocation3 + $0x1], 1 }

</bundles_post_ra>
